<compile_context>
chip_gen: v6e
topology: v6e:2x2x1
jax: 0.10.0
libtpu: 0.0.40
codegen_flags: <defaults>
</compile_context>

<pallas_src>
import jax
import jax.numpy as jnp
from jax.experimental import pallas as pl
from jax.experimental.pallas import tpu as pltpu


def _round_up(n, m):
    return ((n + m - 1) // m) * m


def ffn_kernel(x_ref, t_ref, w1_ref, b1_ref, w2_ref, w2bl_ref, w2br_ref, b2_ref,
               o_ref):
    # x_ref : (TB2, 128) bf16   two batch rows packed per 128-lane row
    # t_ref : (TB2, 2)   bf16   [turn_{2r}, turn_{2r+1}]
    # w1_ref: (128, 512) bf16   blockdiag(W1^T, W1^T), hidden padded 255 -> 256
    # b1_ref: (1, 512)   f32    [b1, 0, b1, 0]
    # w2_ref: (512, 128) bf16   blockdiag(W2a, W2a)
    # w2bl_ref / w2br_ref: (1, 128) f32   turn column of W2, left / right half
    # b2_ref: (1, 128)   f32    [b2, b2]
    # o_ref : (TB2, 128) out dtype
    h = jnp.dot(x_ref[...], w1_ref[...], preferred_element_type=jnp.float32)
    h = jnp.maximum(h + b1_ref[...], 0.0)                       # fc1 + ReLU (f32)
    out = jnp.dot(h.astype(jnp.bfloat16), w2_ref[...],
                  preferred_element_type=jnp.float32)           # fc2 main path
    # Fused epilogue: contribution of the concatenated `turn` column + fc2 bias.
    t = t_ref[...].astype(jnp.float32)                          # (TB2, 2)
    tl = jnp.broadcast_to(t[:, 0:1], out.shape)                 # turn of row 2r
    tr = jnp.broadcast_to(t[:, 1:2], out.shape)                 # turn of row 2r+1
    out = out + tl * w2bl_ref[...] + tr * w2br_ref[...] + b2_ref[...]
    o_ref[...] = out.astype(o_ref.dtype)


def ffn_forward(x, turn, params, *, tb=8192, out_dtype=jnp.bfloat16):
    """x: (B, 8, 8) or (B, 64); turn: (B,) or (B, 1). Returns (B, 64) out_dtype."""
    x2 = x.reshape(-1, 64).astype(jnp.float32)
    t1 = turn.reshape(-1).astype(jnp.float32)
    B = x2.shape[0]

    # ---- weights: transpose, pad hidden 255 -> 256, build block-diagonals ----
    w1_t = jnp.concatenate(
        [params["w1"].T, jnp.zeros((64, 1), jnp.float32)], axis=1)        # (64, 256)
    b1 = jnp.concatenate([params["b1"], jnp.zeros((1,), jnp.float32)])    # (256,)
    w2_t = params["w2"].T                                                 # (256, 64)
    w2a = jnp.concatenate(
        [w2_t[:255, :], jnp.zeros((1, 64), jnp.float32)], axis=0)         # (256, 64)
    w2b = w2_t[255, :]                                                    # (64,)
    b2 = params["b2"]                                                     # (64,)

    z_64x256 = jnp.zeros((64, 256), jnp.float32)
    z_256x64 = jnp.zeros((256, 64), jnp.float32)
    z_64 = jnp.zeros((64,), jnp.float32)
    w1_bd = jnp.block([[w1_t, z_64x256], [z_64x256, w1_t]])               # (128, 512)
    w2_bd = jnp.block([[w2a, z_256x64], [z_256x64, w2a]])                 # (512, 128)
    b1b = jnp.concatenate([b1, b1]).reshape(1, 512)
    b2b = jnp.concatenate([b2, b2]).reshape(1, 128)
    w2bl = jnp.concatenate([w2b, z_64]).reshape(1, 128)   # only left output half
    w2br = jnp.concatenate([z_64, w2b]).reshape(1, 128)   # only right output half

    # ---- batch packing: 2 rows per 128-lane row, tile in packed rows ----
    R = (B + 1) // 2                              # packed rows needed
    TB2 = max(8, (tb // 2) // 8 * 8)              # requested tile, sublane-aligned
    TB2 = min(TB2, _round_up(R, 8))               # don't exceed total rows
    if R > 8:                                     # v7x: keep >= 2 grid steps (2 TCs)
        TB2 = min(TB2, _round_up((R + 1) // 2, 8))
    R_pad = _round_up(R, TB2)
    nb = R_pad // TB2

    B_pad = 2 * R_pad
    if B_pad != B:
        x2 = jnp.pad(x2, ((0, B_pad - B), (0, 0)))
        t1 = jnp.pad(t1, (0, B_pad - B))
    x_pk = x2.reshape(R_pad, 128).astype(jnp.bfloat16)   # free row-major repack
    t_pk = t1.reshape(R_pad, 2).astype(jnp.bfloat16)     # +-1 exact in bf16

    w1_bf = w1_bd.astype(jnp.bfloat16)
    w2_bf = w2_bd.astype(jnp.bfloat16)

    out_bytes = jnp.dtype(out_dtype).itemsize
    flops = 2 * R_pad * (128 * 512 + 512 * 128)
    bytes_accessed = int(
        x_pk.size * 2 + t_pk.size * 2 + w1_bf.size * 2 + b1b.size * 4
        + w2_bf.size * 2 + (w2bl.size + w2br.size + b2b.size) * 4
        + R_pad * 128 * out_bytes)

    grid_spec = pltpu.PrefetchScalarGridSpec(
        num_scalar_prefetch=0,
        grid=(nb,),
        in_specs=[
            pl.BlockSpec((TB2, 128), lambda i: (i, 0)),   # packed x    (streamed)
            pl.BlockSpec((TB2, 2), lambda i: (i, 0)),     # packed turn (streamed)
            pl.BlockSpec((128, 512), lambda i: (0, 0)),   # W1'  (resident)
            pl.BlockSpec((1, 512), lambda i: (0, 0)),     # b1'  (resident)
            pl.BlockSpec((512, 128), lambda i: (0, 0)),   # W2a' (resident)
            pl.BlockSpec((1, 128), lambda i: (0, 0)),     # w2b left  (resident)
            pl.BlockSpec((1, 128), lambda i: (0, 0)),     # w2b right (resident)
            pl.BlockSpec((1, 128), lambda i: (0, 0)),     # b2'  (resident)
        ],
        out_specs=pl.BlockSpec((TB2, 128), lambda i: (i, 0)),
    )

    out = pl.pallas_call(
        ffn_kernel,
        out_shape=jax.ShapeDtypeStruct((R_pad, 128), out_dtype),
        grid_spec=grid_spec,
        compiler_params=pltpu.CompilerParams(
            dimension_semantics=("parallel",),        # v7x: shard batch over 2 TCs
            vmem_limit_bytes=40 * 1024 * 1024,        # > v5e's 16 MiB scoped default
        ),
        cost_estimate=pl.CostEstimate(
            flops=flops, transcendentals=0, bytes_accessed=bytes_accessed),
    )(x_pk, t_pk, w1_bf, b1b, w2_bf, w2bl, w2br, b2b)

    # (R_pad, 128) is byte-identical to row-major (B_pad, 64): unpack + trim.
    return out.reshape(B_pad, 64)[:B]


def init_params(key):
    """Deterministic synthetic params matching nn.Linear(64, 255), nn.Linear(256, 64)."""
    k1, k2, k3, k4 = jax.random.split(key, 4)
    # PyTorch default init: U(-1/sqrt(fan_in), 1/sqrt(fan_in)); weight is (out, in).
    lim1 = 1.0 / jnp.sqrt(64.0)
    lim2 = 1.0 / jnp.sqrt(256.0)
    return {
        "w1": jax.random.uniform(k1, (255, 64), jnp.float32, -lim1, lim1),
        "b1": jax.random.uniform(k2, (255,), jnp.float32, -lim1, lim1),
        "w2": jax.random.uniform(k3, (64, 256), jnp.float32, -lim2, lim2),
        "b2": jax.random.uniform(k4, (64,), jnp.float32, -lim2, lim2),
    }


def ffn_reference(x, turn, params):
    """Pure-JAX f32 reference mirroring the PyTorch forward exactly."""
    x2 = x.reshape(-1, 64).astype(jnp.float32)
    h = x2 @ params["w1"].T + params["b1"]
    h = jnp.maximum(h, 0.0)
    z = jnp.concatenate([h, turn.reshape(-1, 1).astype(jnp.float32)], axis=1)
    return z @ params["w2"].T + params["b2"]


if __name__ == "__main__":
    key = jax.random.PRNGKey(0)
    kx, kt = jax.random.split(key)

    B = 8
    # Reversi board: values in {-1, 0, 1}; turn in {-1, 1} (all exact in bf16).
    x = jax.random.randint(kx, (B, 8, 8), -1, 2).astype(jnp.float32)
    turn = jnp.where(jax.random.bernoulli(kt, 0.5, (B,)), 1.0, -1.0).astype(jnp.float32)

    params = init_params(jax.random.PRNGKey(42))

    out = ffn_forward(x, turn, params)
    out = jax.block_until_ready(out)

    ref = ffn_reference(x, turn, params)
    assert out.shape == (B, 64)
    # bf16 MXU operands + bf16 output vs f32 reference: allow small rounding.
    assert jnp.allclose(out.astype(jnp.float32), ref, atol=5e-2, rtol=5e-2), \
        "mismatch vs reference"

    print("KERNEL_OK")
</pallas_src>

<mosaic_0001>
module attributes {stable_mosaic.version = 11 : i64} {
  func.func @ffn_kernel(%arg0: i32, %arg1: memref<8x128xbf16, #tpu.memory_space<vmem>>, %arg2: memref<8x2xbf16, #tpu.memory_space<vmem>>, %arg3: memref<128x512xbf16, #tpu.memory_space<vmem>>, %arg4: memref<1x512xf32, #tpu.memory_space<vmem>>, %arg5: memref<512x128xbf16, #tpu.memory_space<vmem>>, %arg6: memref<1x128xf32, #tpu.memory_space<vmem>>, %arg7: memref<1x128xf32, #tpu.memory_space<vmem>>, %arg8: memref<1x128xf32, #tpu.memory_space<vmem>>, %arg9: memref<8x128xbf16, #tpu.memory_space<vmem>>) attributes {dimension_semantics = [#tpu.dimension_semantics<parallel>], iteration_bounds = array<i64: 1>, scalar_prefetch = 0 : i64, scratch_operands = 0 : i64, tpu.core_type = #tpu.core_type<tc>, window_params = [{transform_indices = @transform_0, window_bounds = array<i64: 8, 128>}, {transform_indices = @transform_1, window_bounds = array<i64: 8, 2>}, {pipeline_mode = #tpu.pipeline_mode<synchronous>, transform_indices = @transform_2, window_bounds = array<i64: 128, 512>}, {pipeline_mode = #tpu.pipeline_mode<synchronous>, transform_indices = @transform_3, window_bounds = array<i64: 1, 512>}, {pipeline_mode = #tpu.pipeline_mode<synchronous>, transform_indices = @transform_4, window_bounds = array<i64: 512, 128>}, {pipeline_mode = #tpu.pipeline_mode<synchronous>, transform_indices = @transform_5, window_bounds = array<i64: 1, 128>}, {pipeline_mode = #tpu.pipeline_mode<synchronous>, transform_indices = @transform_6, window_bounds = array<i64: 1, 128>}, {pipeline_mode = #tpu.pipeline_mode<synchronous>, transform_indices = @transform_7, window_bounds = array<i64: 1, 128>}, {transform_indices = @transform_8, window_bounds = array<i64: 8, 128>}]} {
    %c0 = arith.constant 0 : index
    %c0_0 = arith.constant 0 : index
    %0 = vector.load %arg1[%c0, %c0_0] : memref<8x128xbf16, #tpu.memory_space<vmem>>, vector<8x128xbf16>
    %c0_1 = arith.constant 0 : index
    %c0_2 = arith.constant 0 : index
    %1 = vector.load %arg3[%c0_1, %c0_2] : memref<128x512xbf16, #tpu.memory_space<vmem>>, vector<128x512xbf16>
    %cst = arith.constant dense<0.000000e+00> : vector<8x512xf32>
    %2 = tpu.matmul %0, %1, %cst {dimension_numbers = #tpu.dot_dimension_numbers<[1], [0], [0], [1], [0, 0, 1, 1], [], []>} : vector<8x128xbf16>, vector<128x512xbf16>, vector<8x512xf32> -> vector<8x512xf32>
    %c0_3 = arith.constant 0 : index
    %c0_4 = arith.constant 0 : index
    %3 = vector.load %arg4[%c0_3, %c0_4] : memref<1x512xf32, #tpu.memory_space<vmem>>, vector<1x512xf32>
    %4 = vector.broadcast %3 : vector<1x512xf32> to vector<8x512xf32>
    %5 = arith.addf %2, %4 : vector<8x512xf32>
    %cst_5 = arith.constant 0.000000e+00 : f32
    %6 = vector.broadcast %cst_5 : f32 to vector<8x512xf32>
    %7 = arith.maximumf %5, %6 : vector<8x512xf32>
    %8 = arith.truncf %7 : vector<8x512xf32> to vector<8x512xbf16>
    %c0_6 = arith.constant 0 : index
    %c0_7 = arith.constant 0 : index
    %9 = vector.load %arg5[%c0_6, %c0_7] : memref<512x128xbf16, #tpu.memory_space<vmem>>, vector<512x128xbf16>
    %cst_8 = arith.constant dense<0.000000e+00> : vector<8x128xf32>
    %10 = tpu.matmul %8, %9, %cst_8 {dimension_numbers = #tpu.dot_dimension_numbers<[1], [0], [0], [1], [0, 0, 1, 1], [], []>} : vector<8x512xbf16>, vector<512x128xbf16>, vector<8x128xf32> -> vector<8x128xf32>
    %c0_9 = arith.constant 0 : index
    %c0_10 = arith.constant 0 : index
    %11 = vector.load %arg2[%c0_9, %c0_10] : memref<8x2xbf16, #tpu.memory_space<vmem>>, vector<8x2xbf16>
    %12 = arith.extf %11 : vector<8x2xbf16> to vector<8x2xf32>
    %13 = vector.extract_strided_slice %12 {offsets = [0, 0], sizes = [8, 1], strides = [1, 1]} : vector<8x2xf32> to vector<8x1xf32>
    %14 = vector.shape_cast %13 : vector<8x1xf32> to vector<8x1xf32>
    %15 = vector.broadcast %14 : vector<8x1xf32> to vector<8x128xf32>
    %16 = vector.extract_strided_slice %12 {offsets = [0, 1], sizes = [8, 1], strides = [1, 1]} : vector<8x2xf32> to vector<8x1xf32>
    %17 = vector.shape_cast %16 : vector<8x1xf32> to vector<8x1xf32>
    %18 = vector.broadcast %17 : vector<8x1xf32> to vector<8x128xf32>
    %c0_11 = arith.constant 0 : index
    %c0_12 = arith.constant 0 : index
    %19 = vector.load %arg6[%c0_11, %c0_12] : memref<1x128xf32, #tpu.memory_space<vmem>>, vector<1x128xf32>
    %20 = vector.broadcast %19 : vector<1x128xf32> to vector<8x128xf32>
    %21 = arith.mulf %15, %20 : vector<8x128xf32>
    %22 = arith.addf %10, %21 : vector<8x128xf32>
    %c0_13 = arith.constant 0 : index
    %c0_14 = arith.constant 0 : index
    %23 = vector.load %arg7[%c0_13, %c0_14] : memref<1x128xf32, #tpu.memory_space<vmem>>, vector<1x128xf32>
    %24 = vector.broadcast %23 : vector<1x128xf32> to vector<8x128xf32>
    %25 = arith.mulf %18, %24 : vector<8x128xf32>
    %26 = arith.addf %22, %25 : vector<8x128xf32>
    %c0_15 = arith.constant 0 : index
    %c0_16 = arith.constant 0 : index
    %27 = vector.load %arg8[%c0_15, %c0_16] : memref<1x128xf32, #tpu.memory_space<vmem>>, vector<1x128xf32>
    %28 = vector.broadcast %27 : vector<1x128xf32> to vector<8x128xf32>
    %29 = arith.addf %26, %28 : vector<8x128xf32>
    %30 = arith.truncf %29 : vector<8x128xf32> to vector<8x128xbf16>
    %c0_17 = arith.constant 0 : index
    %c0_18 = arith.constant 0 : index
    %31 = vector.load %arg9[%c0_17, %c0_18] : memref<8x128xbf16, #tpu.memory_space<vmem>>, vector<8x128xbf16>
    tpu.vector_store %arg9[%c0_17, %c0_18], %30 {strides = array<i32>} : memref<8x128xbf16, #tpu.memory_space<vmem>>, vector<8x128xbf16>,
    return
  }
  func.func @transform_0(%arg0: i32) -> (i32, i32) {
    %c0_i32 = arith.constant 0 : i32
    %c0_i32_0 = arith.constant 0 : i32
    return %arg0, %c0_i32 : i32, i32
  }
  func.func @transform_1(%arg0: i32) -> (i32, i32) {
    %c0_i32 = arith.constant 0 : i32
    %c0_i32_0 = arith.constant 0 : i32
    return %arg0, %c0_i32 : i32, i32
  }
  func.func @transform_2(%arg0: i32) -> (i32, i32) {
    %c0_i32 = arith.constant 0 : i32
    %c0_i32_0 = arith.constant 0 : i32
    %c0_i32_1 = arith.constant 0 : i32
    return %c0_i32, %c0_i32_0 : i32, i32
  }
  func.func @transform_3(%arg0: i32) -> (i32, i32) {
    %c0_i32 = arith.constant 0 : i32
    %c0_i32_0 = arith.constant 0 : i32
    %c0_i32_1 = arith.constant 0 : i32
    return %c0_i32, %c0_i32_0 : i32, i32
  }
  func.func @transform_4(%arg0: i32) -> (i32, i32) {
    %c0_i32 = arith.constant 0 : i32
    %c0_i32_0 = arith.constant 0 : i32
    %c0_i32_1 = arith.constant 0 : i32
    return %c0_i32, %c0_i32_0 : i32, i32
  }
  func.func @transform_5(%arg0: i32) -> (i32, i32) {
    %c0_i32 = arith.constant 0 : i32
    %c0_i32_0 = arith.constant 0 : i32
    %c0_i32_1 = arith.constant 0 : i32
    return %c0_i32, %c0_i32_0 : i32, i32
  }
  func.func @transform_6(%arg0: i32) -> (i32, i32) {
    %c0_i32 = arith.constant 0 : i32
    %c0_i32_0 = arith.constant 0 : i32
    %c0_i32_1 = arith.constant 0 : i32
    return %c0_i32, %c0_i32_0 : i32, i32
  }
  func.func @transform_7(%arg0: i32) -> (i32, i32) {
    %c0_i32 = arith.constant 0 : i32
    %c0_i32_0 = arith.constant 0 : i32
    %c0_i32_1 = arith.constant 0 : i32
    return %c0_i32, %c0_i32_0 : i32, i32
  }
  func.func @transform_8(%arg0: i32) -> (i32, i32) {
    %c0_i32 = arith.constant 0 : i32
    %c0_i32_0 = arith.constant 0 : i32
    return %arg0, %c0_i32 : i32, i32
  }
}

</mosaic_0001>

<bundles_post_ra>
// kernel: tpu_custom_call.1
= control target key start
LH: loop header
LB: loop body
LE: loop exit
PB: predicated region body
PF: predicated region fallthrough
CT: control target
= control target key end

     0   :  { %13 = vsyncpa [#allocation3], 0  ;;  %s1103_s0 = inlined_call_operand.vmem [shape: bf16[8,128], index: 0, kind: input, shape index: {}]   ;;  %s1104_s1 = inlined_call_operand.vmem [shape: bf16[8,2], index: 1, kind: input, shape index: {}]   ;;  %s1105_s2 = inlined_call_operand.hbm [shape: bf16[128,512], index: 2, kind: input, shape index: {}]   ;;  %s1106_s3 = inlined_call_operand.vmem [shape: f32[1,512], index: 3, kind: input, shape index: {}]   ;;  %s1107_s4 = inlined_call_operand.hbm [shape: bf16[512,128], index: 4, kind: input, shape index: {}]   ;;  %s1108_s5 = inlined_call_operand.vmem [shape: f32[1,128], index: 5, kind: input, shape index: {}]   ;;  %s1109_s6 = inlined_call_operand.vmem [shape: f32[1,128], index: 6, kind: input, shape index: {}]   ;;  %s1110_s7 = inlined_call_operand.vmem [shape: f32[1,128], index: 7, kind: input, shape index: {}]   ;;  %s1111_s8 = inlined_call_operand.hbm [shape: bf16[8,128], index: 8, kind: output, shape index: {}]  }
   0x1   :  { %14 = vsyncpa [#allocation6], 0 }
   0x2   :  { %15 = vsyncpa [#allocation4], 0  ;;  %s1022_s27 = smov [#allocation2]  }
   0x3   :  { %s25_s28 = sshll.u32 %s1022_s27, 4  ;;  %s26_s28 = int_to_ptr.vmem [resolvable:$true] %s25_s28 }
   0x4   :  { %s964_s29 = scalar_lea.vmem %s26_s28, 4096  ;;  %p969_p1 = scmp.lt.s32.totalorder %s26_s28, %s26_s28 }
   0x5   :  { %p965_p0 = scmp.ne.s32.totalorder %s26_s28, %s964_s29  ;;  %p970_p2 = scmp.lt.s32.totalorder %s964_s29, %s964_s29 }
   0x7   :  { %p971_p3 = por %p970_p2, %p969_p1 }
   0x9   :  { %p972_p4 = pnand %p971_p3, %p965_p0 }
   0xb   :  { %975 = shalt.err (!%p972_p4)
}
   0xc   :  { %s1023_s30 = smov 256   ;;  %s1024_s9 = smov 16  }
   0xd   :  { %31 = dma.hbm_to_vmem [thread:$0]  %s1105_s2, 4096, %s26_s28, [#allocation3], %s1023_s30, %s1023_s30, %s1024_s9  }
   0xe   :  { %s1025_s12 = smov [#allocation5]  }
   0xf   :  { %s39_s13 = sshll.u32 %s1025_s12, 4  ;;  %s40_s13 = int_to_ptr.vmem [resolvable:$true] %s39_s13 }
  0x10   :  { %s984_s14 = scalar_lea.vmem %s40_s13, 4096  ;;  %p989_p6 = scmp.lt.s32.totalorder %s40_s13, %s40_s13 }
  0x11   :  { %p985_p5 = scmp.ne.s32.totalorder %s40_s13, %s984_s14  ;;  %p990_p7 = scmp.lt.s32.totalorder %s984_s14, %s984_s14 }
  0x13   :  { %p991_p8 = por %p990_p7, %p989_p6 }
  0x15   :  { %p992_p9 = pnand %p991_p8, %p985_p5 }
  0x17   :  { %995 = shalt.err (!%p992_p9)
}
  0x18   :  { %s1026_s15 = smov 64   ;;  %s1027_s16 = smov 4  }
  0x19   :  { %45 = dma.hbm_to_vmem [thread:$0]  %s1107_s4, 4096, %s40_s13, [#allocation6], %s1026_s15, %s1026_s15, %s1027_s16  }
  0x1a   :  { %1016 = dma.done.wait [#allocation3], 4096  }
  0x1b   :  { %1017 = vsyncadd [#allocation3], 4294963200 }
  0x1c   :  { %1018 = dma.done.wait [#allocation6], 4096  }
  0x1d   :  { %1019 = vsyncadd [#allocation6], 4294963200  ;;  %v1028_v0 = vmov 0   ;;  %v876_v1 = vld [vmem:[#allocation2 + $0xe4] ss:$16 sps:$4 sm:$0xff]   ;;  %v924_v33 = vld [vmem:[#allocation5 + $0x78] sm:$0xff]  }
  0x1e   :  { %306 = vmatprep.mubr.bf16.mxu0 %v1028_v0  ;;  %347 = vmatprep.mubr.bf16.mxu1 %v1028_v0  ;;  %v878_v2 = vld [vmem:[#allocation2 + $0xec] ss:$16 sps:$4 sm:$0xff]   ;;  %v880_v3 = vld [vmem:[#allocation2 + $0xe0] ss:$16 sps:$4 sm:$0xff]   ;;  %v881_v4 = vld [vmem:[#allocation2 + $0xe8] ss:$16 sps:$4 sm:$0xff]  }
  0x1f   :  { %874 = vset.pattern.permute.xlu0 %v1028_v0  ;;  %274 = vmatprep.subr.bf16.mxu0 %v876_v1  ;;  %v882_v5 = vld [vmem:[#allocation2 + $0xc4] ss:$16 sps:$4 sm:$0xff]   ;;  %v884_v6 = vld [vmem:[#allocation2 + $0xcc] ss:$16 sps:$4 sm:$0xff]   ;;  %v886_v7 = vld [vmem:[#allocation2 + $0xc0] ss:$16 sps:$4 sm:$0xff]  }
  0x20   :  { %315 = vmatprep.subr.bf16.mxu1 %v878_v2  ;;  %275 = vmatpush1.bf16.msra.mxu0 %v880_v3  ;;  %v887_v8 = vld [vmem:[#allocation2 + $0xc8] ss:$16 sps:$4 sm:$0xff]   ;;  %v888_v9 = vld [vmem:[#allocation2 + $0xa4] ss:$16 sps:$4 sm:$0xff]   ;;  %v890_v10 = vld [vmem:[#allocation2 + $0xac] ss:$16 sps:$4 sm:$0xff]  }
  0x21   :  { %316 = vmatpush1.bf16.msra.mxu1 %v881_v4  ;;  %276 = vmatprep.subr.bf16.mxu0 %v882_v5  ;;  %v892_v11 = vld [vmem:[#allocation2 + $0xa0] ss:$16 sps:$4 sm:$0xff]   ;;  %v893_v12 = vld [vmem:[#allocation2 + $0xa8] ss:$16 sps:$4 sm:$0xff]   ;;  %v894_v13 = vld [vmem:[#allocation2 + $0x84] ss:$16 sps:$4 sm:$0xff]   ;;  %v94_v5 = vlaneseq }
  0x22   :  { %317 = vmatprep.subr.bf16.mxu1 %v884_v6  ;;  %v896_v14 = vld [vmem:[#allocation2 + $0x8c] ss:$16 sps:$4 sm:$0xff]   ;;  %v898_v15 = vld [vmem:[#allocation2 + $0x80] ss:$16 sps:$4 sm:$0xff]   ;;  %v899_v16 = vld [vmem:[#allocation2 + $0x88] ss:$16 sps:$4 sm:$0xff]  }
  0x23   :  { %v900_v17 = vld [vmem:[#allocation2 + $0x64] ss:$16 sps:$4 sm:$0xff]   ;;  %v902_v18 = vld [vmem:[#allocation2 + $0x6c] ss:$16 sps:$4 sm:$0xff]   ;;  %v904_v19 = vld [vmem:[#allocation2 + $0x60] ss:$16 sps:$4 sm:$0xff]  }
  0x24   :  { %277 = vmatpush1.bf16.msra.mxu0 %v886_v7  ;;  %v905_v20 = vld [vmem:[#allocation2 + $0x68] ss:$16 sps:$4 sm:$0xff]   ;;  %v906_v21 = vld [vmem:[#allocation2 + $0x44] ss:$16 sps:$4 sm:$0xff]   ;;  %v908_v22 = vld [vmem:[#allocation2 + $0x4c] ss:$16 sps:$4 sm:$0xff]  }
  0x25   :  { %318 = vmatpush1.bf16.msra.mxu1 %v887_v8  ;;  %278 = vmatprep.subr.bf16.mxu0 %v888_v9  ;;  %v910_v23 = vld [vmem:[#allocation2 + $0x40] ss:$16 sps:$4 sm:$0xff]   ;;  %v911_v24 = vld [vmem:[#allocation2 + $0x48] ss:$16 sps:$4 sm:$0xff]   ;;  %v912_v25 = vld [vmem:[#allocation2 + $0x24] ss:$16 sps:$4 sm:$0xff]  }
  0x26   :  { %319 = vmatprep.subr.bf16.mxu1 %v890_v10  ;;  %v914_v26 = vld [vmem:[#allocation2 + $0x2c] ss:$16 sps:$4 sm:$0xff]   ;;  %v916_v27 = vld [vmem:[#allocation2 + $0x20] ss:$16 sps:$4 sm:$0xff]   ;;  %v917_v28 = vld [vmem:[#allocation2 + $0x28] ss:$16 sps:$4 sm:$0xff]  }
  0x27   :  { %v918_v29 = vld [vmem:[#allocation2 + $0x4] ss:$16 sps:$4 sm:$0xff]   ;;  %v920_v30 = vld [vmem:[#allocation2 + $0xc] ss:$16 sps:$4 sm:$0xff]   ;;  %v922_v31 = vld [vmem:[#allocation2] ss:$16 sps:$4 sm:$0xff]  }
  0x28   :  { %279 = vmatpush1.bf16.msra.mxu0 %v892_v11  ;;  %v923_v32 = vld [vmem:[#allocation2 + $0x8] ss:$16 sps:$4 sm:$0xff]   ;;  %v59_v35 = vld [vmem:[%s1103_s0] sm:$0xf]  ;;  %v928_v38 = vld [vmem:[#allocation5 + $0x70] sm:$0xff]   ;;  %v1029_v4 = vmov 1  }
  0x29   :  { %320 = vmatpush1.bf16.msra.mxu1 %v893_v12  ;;  %280 = vmatprep.subr.bf16.mxu0 %v894_v13  ;;  %v925_v34 = vld [vmem:[#allocation5 + $0xf8] sm:$0xff]   ;;  %v929_v39 = vld [vmem:[#allocation5 + $0xf0] sm:$0xff]   ;;  %v932_v42 = vld [vmem:[#allocation5 + $0x68] sm:$0xff]   ;;  %v95_v6 = vshrl.u32 %v94_v5, 7  ;;  %s1030_s25 = smov [#allocation7]  }
  0x2a   :  { %321 = vmatprep.subr.bf16.mxu1 %v896_v14  ;;  %v926_v36 = vld [vmem:[#allocation5 + $0x38] sm:$0xff]   ;;  %v930_v40 = vld [vmem:[#allocation5 + $0x30] sm:$0xff]   ;;  %v933_v43 = vld [vmem:[#allocation5 + $0xe8] sm:$0xff]   ;;  %s744_s26 = sshll.u32 %s1030_s25, 4  ;;  %s745_s26 = int_to_ptr.vmem [resolvable:$true] %s744_s26 }
  0x2b   :  { %v927_v37 = vld [vmem:[#allocation5 + $0xb8] sm:$0xff]   ;;  %v931_v41 = vld [vmem:[#allocation5 + $0xb0] sm:$0xff]   ;;  %v934_v44 = vld [vmem:[#allocation5 + $0x28] sm:$0xff]   ;;  %v96_v7 = vsub.s32 0, %v95_v6  ;;  %v104_v8 = vsub.s32 2, %v95_v6  ;;  %v100_v10 = vsub.s32 1, %v95_v6  ;;  %p1001_p11 = scmp.lt.s32.totalorder %s745_s26, %s745_s26 }
  0x2c   :  { %281 = vmatpush1.bf16.msra.mxu0 %v898_v15  ;;  %v935_v45 = vld [vmem:[#allocation5 + $0xa8] sm:$0xff]   ;;  %v936_v46 = vld [vmem:[#allocation5 + $0x60] sm:$0xff]   ;;  %v940_v50 = vld [vmem:[#allocation5 + $0x58] sm:$0xff]   ;;  %v108_v11 = vsub.s32 3, %v95_v6 }
  0x2d   :  { %322 = vmatpush1.bf16.msra.mxu1 %v899_v16  ;;  %282 = vmatprep.subr.bf16.mxu0 %v900_v17  ;;  %v937_v47 = vld [vmem:[#allocation5 + $0xe0] sm:$0xff]   ;;  %v941_v51 = vld [vmem:[#allocation5 + $0xd8] sm:$0xff]   ;;  %v944_v54 = vld [vmem:[#allocation5 + $0x50] sm:$0xff]  }
  0x2e   :  { %323 = vmatprep.subr.bf16.mxu1 %v902_v18  ;;  %v938_v48 = vld [vmem:[#allocation5 + $0x20] sm:$0xff]   ;;  %v942_v52 = vld [vmem:[#allocation5 + $0x18] sm:$0xff]   ;;  %v945_v55 = vld [vmem:[#allocation5 + $0xd0] sm:$0xff]  }
  0x2f   :  { %v939_v49 = vld [vmem:[#allocation5 + $0xa0] sm:$0xff]   ;;  %v943_v53 = vld [vmem:[#allocation5 + $0x98] sm:$0xff]   ;;  %v946_v56 = vld [vmem:[#allocation5 + $0x10] sm:$0xff]  }
  0x30   :  { %283 = vmatpush1.bf16.msra.mxu0 %v904_v19  ;;  %v947_v57 = vld [vmem:[#allocation5 + $0x90] sm:$0xff]   ;;  %v948_v58 = vld [vmem:[#allocation5 + $0x48] sm:$0xff]   ;;  %v952_v62 = vld [vmem:[#allocation5 + $0x40] sm:$0xff]  }
  0x31   :  { %324 = vmatpush1.bf16.msra.mxu1 %v905_v20  ;;  %284 = vmatprep.subr.bf16.mxu0 %v906_v21  ;;  %v949_v59 = vld [vmem:[#allocation5 + $0xc8] sm:$0xff]   ;;  %v953_v63 = vld [vmem:[#allocation5 + $0xc0] sm:$0xff]  }
  0x32   :  { %325 = vmatprep.subr.bf16.mxu1 %v908_v22  ;;  %v950_v60 = vld [vmem:[#allocation5 + $0x8] sm:$0xff]   ;;  %v954_v0 = vld [vmem:[#allocation5] sm:$0xff]  }
  0x33   :  { %v951_v61 = vld [vmem:[#allocation5 + $0x88] sm:$0xff]   ;;  %v955_v1 = vld [vmem:[#allocation5 + $0x80] sm:$0xff]  }
  0x34   :  { %285 = vmatpush1.bf16.msra.mxu0 %v910_v23  ;;  %v428_v2 = vld [vmem:[%s1104_s1] sm:$0xf] }
  0x35   :  { %326 = vmatpush1.bf16.msra.mxu1 %v911_v24  ;;  %286 = vmatprep.subr.bf16.mxu0 %v912_v25  ;;  %v429_v3 = vunpack.c.l.bf16 %v428_v2  ;;  %v92_v9 = vld [vmem:[%s1106_s3] sm:$0xf] }
  0x36   :  { %327 = vmatprep.subr.bf16.mxu1 %v914_v26  ;;  %v97_v12 = vrot.slane %v92_v9, %v96_v7  ;;  %v105_v13 = vrot.slane %v92_v9, %v104_v8  ;;  %v101_v14 = vrot.slane %v92_v9, %v100_v10  ;;  %v109_v15 = vrot.slane %v92_v9, %v108_v11 }
  0x37   :  { %432 = vperm.xlu0 %874, %v429_v3  }
  0x38   :  { %287 = vmatpush1.bf16.msra.mxu0 %v916_v27 }
  0x39   :  { %328 = vmatpush1.bf16.msra.mxu1 %v917_v28  ;;  %288 = vmatprep.subr.bf16.mxu0 %v918_v29 }
  0x3a   :  { %329 = vmatprep.subr.bf16.mxu1 %v920_v30 }
  0x3b   :  { %875 = vset.pattern.permute.xlu0 %v1029_v4 }
  0x3c   :  { %289 = vmatpush1.bf16.msra.mxu0 %v922_v31  ;;  %436 = vperm.xlu0 %875, %v429_v3  }
  0x3d   :  { %330 = vmatpush1.bf16.msra.mxu1 %v923_v32  ;;  %821 = vmatprep.subr.bf16.mxu0 %v924_v33 }
  0x3e   :  { %843 = vmatprep.subr.bf16.mxu1 %v925_v34 }
  0x3f   :  { %307 = vmatmul.mubr.bf16.vlgmr.msra.gmra.mxu0 %v59_v35 }
  0x40   :  { %348 = vmatmul.mubr.bf16.vlgmr.msra.gmra.mxu1 %v59_v35  ;;  %822 = vmatpush3.bf16.msra.mxu0 %v926_v36 }
  0x41   :  { %844 = vmatpush3.bf16.msra.mxu1 %v927_v37  ;;  %823 = vmatprep.subr.bf16.mxu0 %v928_v38  ;;  %v786_v37 = vld [vmem:[%s1108_s5] ss:$0 sm:$0xff] }
  0x42   :  { %845 = vmatprep.subr.bf16.mxu1 %v929_v39 }
  0x44   :  { %824 = vmatpush3.bf16.msra.mxu0 %v930_v40 }
  0x45   :  { %846 = vmatpush3.bf16.msra.mxu1 %v931_v41  ;;  %825 = vmatprep.subr.bf16.mxu0 %v932_v42 }
  0x46   :  { %847 = vmatprep.subr.bf16.mxu1 %v933_v43 }
  0x48   :  { %826 = vmatpush3.bf16.msra.mxu0 %v934_v44  ;;  %v819_v44 = vld [vmem:[%s1109_s6] ss:$0 sm:$0xff]  ;;  %s996_s6 = scalar_lea.vmem %s745_s26, 64 }
  0x49   :  { %848 = vmatpush3.bf16.msra.mxu1 %v935_v45  ;;  %827 = vmatprep.subr.bf16.mxu0 %v936_v46  ;;  %p997_p10 = scmp.ne.s32.totalorder %s745_s26, %s996_s6  ;;  %p1002_p12 = scmp.lt.s32.totalorder %s996_s6, %s996_s6 }
  0x4a   :  { %849 = vmatprep.subr.bf16.mxu1 %v937_v47 }
  0x4b   :  { %p1003_p13 = por %p1002_p12, %p1001_p11 }
  0x4c   :  { %828 = vmatpush3.bf16.msra.mxu0 %v938_v48 }
  0x4d   :  { %850 = vmatpush3.bf16.msra.mxu1 %v939_v49  ;;  %829 = vmatprep.subr.bf16.mxu0 %v940_v50  ;;  %p1004_p0 = pnand %p1003_p13, %p997_p10 }
  0x4e   :  { %851 = vmatprep.subr.bf16.mxu1 %v941_v51 }
  0x50   :  { %830 = vmatpush3.bf16.msra.mxu0 %v942_v52 }
  0x51   :  { %852 = vmatpush3.bf16.msra.mxu1 %v943_v53  ;;  %831 = vmatprep.subr.bf16.mxu0 %v944_v54  ;;  %v820_v54 = vld [vmem:[%s1110_s7] ss:$0 sm:$0xff] }
  0x52   :  { %853 = vmatprep.subr.bf16.mxu1 %v945_v55 }
  0x54   :  { %832 = vmatpush3.bf16.msra.mxu0 %v946_v56 }
  0x55   :  { %854 = vmatpush3.bf16.msra.mxu1 %v947_v57  ;;  %833 = vmatprep.subr.bf16.mxu0 %v948_v58 }
  0x56   :  { %855 = vmatprep.subr.bf16.mxu1 %v949_v59 }
  0x58   :  { %834 = vmatpush3.bf16.msra.mxu0 %v950_v60 }
  0x59   :  { %856 = vmatpush3.bf16.msra.mxu1 %v951_v61  ;;  %835 = vmatprep.subr.bf16.mxu0 %v952_v62 }
  0x5a   :  { %857 = vmatprep.subr.bf16.mxu1 %v953_v63 }
  0x5c   :  { %836 = vmatpush3.bf16.msra.mxu0 %v954_v0 }
  0x5d   :  { %858 = vmatpush3.bf16.msra.mxu1 %v955_v1 }
  0xb2   :  { %v433_v36 = vpop.permute.xlu0 %432 }
  0xb3   :  { %v446_v40 = vmul.f32 %v786_v37, %v433_v36 }
  0xb7   :  { %v437_v41 = vpop.permute.xlu0 %436 }
  0xb8   :  { %v726_v50 = vmul.f32 %v819_v44, %v437_v41 }
  0xff   :  { %v308_v16 = vpop.f32.mrf.mxu0 }
 0x100   :  { %v349_v17 = vpop.f32.mrf.mxu1  ;;  %v309_v18 = vadd.f32 %v308_v16, %v97_v12 }
 0x101   :  { %v350_v19 = vadd.f32 %v349_v17, %v105_v13  ;;  %v310_v20 = vpop.f32.mrf.mxu0 }
 0x102   :  { %v351_v21 = vpop.f32.mrf.mxu1  ;;  %v311_v23 = vadd.f32 %v310_v20, %v101_v14  ;;  %v356_v25 = vmax.f32 %v309_v18, 0.0 }
 0x103   :  { %v358_v22 = vmax.f32 %v350_v19, 0.0  ;;  %v352_v24 = vadd.f32 %v351_v21, %v109_v15  ;;  %v312_v26 = vpop.f32.mrf.mxu0 }
 0x104   :  { %v353_v27 = vpop.f32.mrf.mxu1  ;;  %v357_v28 = vmax.f32 %v311_v23, 0.0  ;;  %v360_v35 = vpack.c.bf16 %v356_v25, %v356_v25 }
 0x105   :  { %v359_v29 = vmax.f32 %v352_v24, 0.0  ;;  %v362_v30 = vpack.c.bf16 %v358_v22, %v358_v22  ;;  %v313_v31 = vpop.f32.mrf.mxu0 }
 0x106   :  { %v354_v32 = vpop.f32.mrf.mxu1  ;;  %v361_v33 = vpack.c.bf16 %v357_v28, %v357_v28 }
 0x107   :  { %v363_v34 = vpack.c.bf16 %v359_v29, %v359_v29 }
 0x108   :  { %671 = vmatprep.mubr.bf16.mxu0 %v361_v33 }
 0x109   :  { %711 = vmatprep.mubr.bf16.mxu1 %v363_v34  ;;  %672 = vmatmul.mubr.bf16.vlgmr.msra.gmra.mxu0 %v360_v35 }
 0x10a   :  { %712 = vmatmul.mubr.bf16.vlgmr.msra.gmra.mxu1 %v362_v30 }
 0x1c9   :  { %v837_v38 = vpop.f32.mrf.mxu0 }
 0x1ca   :  { %v859_v39 = vpop.f32.mrf.mxu1 }
 0x1cb   :  { %v838_v42 = vpop.f32.mrf.mxu0 }
 0x1cc   :  { %v860_v43 = vpop.f32.mrf.mxu1  ;;  %v839_v45 = vadd.f32 %v838_v42, %v837_v38 }
 0x1cd   :  { %v840_v46 = vpop.f32.mrf.mxu0  ;;  %v861_v49 = vadd.f32 %v860_v43, %v859_v39 }
 0x1ce   :  { %v862_v47 = vpop.f32.mrf.mxu1  ;;  %v674_v48 = vadd.f32 %v839_v45, %v446_v40 }
 0x1cf   :  { %v841_v51 = vpop.f32.mrf.mxu0 }
 0x1d0   :  { %v863_v52 = vpop.f32.mrf.mxu1  ;;  %v714_v53 = vadd.f32 %v861_v49, %v674_v48 }
 0x1d2   :  { %v727_v55 = vadd.f32 %v726_v50, %v714_v53 }
 0x1d4   :  { %v735_v56 = vadd.f32 %v820_v54, %v727_v55 }
 0x1d6   :  { %v736_v57 = vpack.c.bf16 %v735_v56, %v735_v56 }
 0x1d8   :  { %737 = vst [vmem:[#allocation7] sm:$0xf] %v736_v57 }
 0x1d9   :  { %1007 = shalt.err (!%p1004_p0)
}
 0x1da   :  { %747 = dma.vmem_to_hbm [thread:$0]  %s745_s26, 64, %s1111_s8, [#allocation4]  }
 0x1db   :  { %1020 = dma.done.wait [#allocation4], 64  }
 0x1dc   :  { %1021 = vsyncadd [#allocation4], 4294967232 }
 0x1dd   :  { %751 = vsyncpa [#allocation3], 1 }
 0x1de   :  { %752 = vsyncpa [#allocation6], 1 }
 0x1df   :  { %753 = vsyncpa [#allocation4], 1 }

</bundles_post_ra>
